<compile_context>
chip_gen: v6e
topology: v6e:2x2x1
jax: 0.10.0
libtpu: 0.0.40
codegen_flags: <defaults>
</compile_context>

<pallas_src>
import functools

import jax
import jax.numpy as jnp
from jax.experimental import pallas as pl
from jax.experimental.pallas import tpu as pltpu


def _round_up(n, m):
    return ((n + m - 1) // m) * m


def _silu_f32(x):
    # SiLU(x) = x * sigmoid(x); lax.logistic routes the transcendental to the EUP.
    return x * jax.lax.logistic(x)


def mlp_kernel(x_ref, w1_ref, b1_ref, w2_ref, b2_ref, w3_ref, b3_ref, o_ref):
    cd = x_ref.dtype  # compute (matmul input) dtype, e.g. bfloat16
    x = x_ref[...]

    # Layer 1: Linear(input_dim -> hidden) + SiLU (accumulate in f32)
    h = jnp.dot(x, w1_ref[...], preferred_element_type=jnp.float32) + b1_ref[...]
    h = _silu_f32(h).astype(cd)

    # Hidden layer: Linear(hidden -> hidden) + SiLU   (n_hidden_layers = 1)
    h = jnp.dot(h, w2_ref[...], preferred_element_type=jnp.float32) + b2_ref[...]
    h = _silu_f32(h).astype(cd)

    # Output layer: Linear(hidden -> output_dim), no activation
    out = jnp.dot(h, w3_ref[...], preferred_element_type=jnp.float32) + b3_ref[...]
    o_ref[...] = out.astype(o_ref.dtype)


@functools.partial(jax.jit, static_argnames=("tile_b", "compute_dtype"))
def mlp_forward(x, params, tile_b=512, compute_dtype=jnp.bfloat16):
    """Fused MLP forward with a Pallas TPU kernel.

    x: (B, input_dim) float32
    params: dict with w1 (I,H), b1 (1,H), w2 (H,H), b2 (1,H), w3 (H,O), b3 (1,O)
    Returns (B, output_dim) float32.
    """
    w1, b1 = params["w1"], params["b1"]
    w2, b2 = params["w2"], params["b2"]
    w3, b3 = params["w3"], params["b3"]

    B, I = x.shape
    H = w1.shape[1]
    O = w3.shape[1]

    # Lane-dense (multiple-of-128) feature dims -> unmasked MXU tiles & stores.
    I_p = _round_up(I, 128)
    H_p = _round_up(H, 128)
    O_p = _round_up(O, 128)

    # Batch tile: as large as requested (<= padded batch), multiple of 16 so
    # bf16 sublane packing is clean.  Batch is padded, not asserted.
    tb = max(16, min(_round_up(tile_b, 16), _round_up(B, 16)))
    B_p = _round_up(B, tb)

    cd = compute_dtype
    x_p = jnp.pad(x.astype(cd), ((0, B_p - B), (0, I_p - I)))
    w1_p = jnp.pad(w1.astype(cd), ((0, I_p - I), (0, H_p - H)))
    w2_p = jnp.pad(w2.astype(cd), ((0, H_p - H), (0, H_p - H)))
    w3_p = jnp.pad(w3.astype(cd), ((0, H_p - H), (0, O_p - O)))
    # Biases stay f32: they add directly onto the f32 accumulators.
    b1_p = jnp.pad(b1.astype(jnp.float32), ((0, 0), (0, H_p - H)))
    b2_p = jnp.pad(b2.astype(jnp.float32), ((0, 0), (0, H_p - H)))
    b3_p = jnp.pad(b3.astype(jnp.float32), ((0, 0), (0, O_p - O)))

    grid = (B_p // tb,)

    # Explicit VMEM budget: double-buffered x/out tiles + resident weights,
    # with headroom; clamp to 64 MiB so it also fits a v7x TensorCore.
    itemsize = jnp.dtype(cd).itemsize
    weight_bytes = (I_p * H_p + H_p * H_p + H_p * O_p) * itemsize
    bias_bytes = (2 * H_p + O_p) * 4
    act_bytes = tb * (I_p * itemsize + O_p * 4)
    vmem_limit = int(
        min(64 * 2**20, max(16 * 2**20, 2.5 * (weight_bytes + bias_bytes + act_bytes)))
    )

    weight_spec = lambda shape: pl.BlockSpec(shape, lambda i: (0, 0))

    out_p = pl.pallas_call(
        mlp_kernel,
        out_shape=jax.ShapeDtypeStruct((B_p, O_p), jnp.float32),
        grid_spec=pltpu.PrefetchScalarGridSpec(
            num_scalar_prefetch=0,
            grid=grid,
            in_specs=[
                pl.BlockSpec((tb, I_p), lambda i: (i, 0)),  # x batch tile
                weight_spec((I_p, H_p)),                    # w1 (resident)
                weight_spec((1, H_p)),                      # b1
                weight_spec((H_p, H_p)),                    # w2 (resident)
                weight_spec((1, H_p)),                      # b2
                weight_spec((H_p, O_p)),                    # w3 (resident)
                weight_spec((1, O_p)),                      # b3
            ],
            out_specs=pl.BlockSpec((tb, O_p), lambda i: (i, 0)),
        ),
        compiler_params=pltpu.CompilerParams(
            dimension_semantics=("parallel",),  # batch tiles shard across TCs
            vmem_limit_bytes=vmem_limit,
        ),
    )(x_p, w1_p, b1_p, w2_p, b2_p, w3_p, b3_p)

    return out_p[:B, :O]


def init_mlp_params(key, input_dim, output_dim, hidden_dim):
    """Deterministic synthetic parameter init (uniform, akin to torch's default)."""
    ks = jax.random.split(key, 6)

    def lin(kw, kb, fan_in, fan_out):
        bound = 1.0 / jnp.sqrt(fan_in)
        w = jax.random.uniform(kw, (fan_in, fan_out), jnp.float32, -bound, bound)
        b = jax.random.uniform(kb, (1, fan_out), jnp.float32, -bound, bound)
        return w, b

    w1, b1 = lin(ks[0], ks[1], input_dim, hidden_dim)
    w2, b2 = lin(ks[2], ks[3], hidden_dim, hidden_dim)
    w3, b3 = lin(ks[4], ks[5], hidden_dim, output_dim)
    return {"w1": w1, "b1": b1, "w2": w2, "b2": b2, "w3": w3, "b3": b3}


def mlp_reference(x, params, compute_dtype=jnp.float32):
    """Pure-JAX reference with the same compute-dtype casting as the kernel."""
    cd = compute_dtype

    def lin(h, w, b):
        y = jnp.dot(h.astype(cd), w.astype(cd), preferred_element_type=jnp.float32)
        return y + b.astype(jnp.float32)

    h = jax.nn.silu(lin(x, params["w1"], params["b1"]))
    h = jax.nn.silu(lin(h, params["w2"], params["b2"]))
    return lin(h, params["w3"], params["b3"])


if __name__ == "__main__":
    # Small shapes consistent with forward(x: (batch_size, input_dim)).
    batch_size = 8
    input_dim = 16
    hidden_dim = 32
    output_dim = 8

    key = jax.random.PRNGKey(0)
    k_x, k_p = jax.random.split(key)

    x = jax.random.normal(k_x, (batch_size, input_dim), dtype=jnp.float32)
    params = init_mlp_params(k_p, input_dim, output_dim, hidden_dim)

    out = mlp_forward(x, params)
    out = jax.block_until_ready(out)

    ref_bf16 = mlp_reference(x, params, compute_dtype=jnp.bfloat16)
    assert out.shape == (batch_size, output_dim)
    assert jnp.allclose(out, ref_bf16, atol=1e-2, rtol=1e-2), "mismatch vs reference"

    print("KERNEL_OK")
</pallas_src>

<mosaic_0001>
module attributes {stable_mosaic.version = 11 : i64} {
  func.func @mlp_kernel(%arg0: i32, %arg1: memref<16x128xbf16, #tpu.memory_space<vmem>>, %arg2: memref<128x128xbf16, #tpu.memory_space<vmem>>, %arg3: memref<1x128xf32, #tpu.memory_space<vmem>>, %arg4: memref<128x128xbf16, #tpu.memory_space<vmem>>, %arg5: memref<1x128xf32, #tpu.memory_space<vmem>>, %arg6: memref<128x128xbf16, #tpu.memory_space<vmem>>, %arg7: memref<1x128xf32, #tpu.memory_space<vmem>>, %arg8: memref<16x128xf32, #tpu.memory_space<vmem>>) attributes {dimension_semantics = [#tpu.dimension_semantics<parallel>], iteration_bounds = array<i64: 1>, scalar_prefetch = 0 : i64, scratch_operands = 0 : i64, tpu.core_type = #tpu.core_type<tc>, window_params = [{transform_indices = @transform_0, window_bounds = array<i64: 16, 128>}, {pipeline_mode = #tpu.pipeline_mode<synchronous>, transform_indices = @transform_1, window_bounds = array<i64: 128, 128>}, {pipeline_mode = #tpu.pipeline_mode<synchronous>, transform_indices = @transform_2, window_bounds = array<i64: 1, 128>}, {pipeline_mode = #tpu.pipeline_mode<synchronous>, transform_indices = @transform_3, window_bounds = array<i64: 128, 128>}, {pipeline_mode = #tpu.pipeline_mode<synchronous>, transform_indices = @transform_4, window_bounds = array<i64: 1, 128>}, {pipeline_mode = #tpu.pipeline_mode<synchronous>, transform_indices = @transform_5, window_bounds = array<i64: 128, 128>}, {pipeline_mode = #tpu.pipeline_mode<synchronous>, transform_indices = @transform_6, window_bounds = array<i64: 1, 128>}, {transform_indices = @transform_7, window_bounds = array<i64: 16, 128>}]} {
    %c0 = arith.constant 0 : index
    %c0_0 = arith.constant 0 : index
    %0 = vector.load %arg1[%c0, %c0_0] : memref<16x128xbf16, #tpu.memory_space<vmem>>, vector<16x128xbf16>
    %c0_1 = arith.constant 0 : index
    %c0_2 = arith.constant 0 : index
    %1 = vector.load %arg2[%c0_1, %c0_2] : memref<128x128xbf16, #tpu.memory_space<vmem>>, vector<128x128xbf16>
    %cst = arith.constant dense<0.000000e+00> : vector<16x128xf32>
    %2 = tpu.matmul %0, %1, %cst {dimension_numbers = #tpu.dot_dimension_numbers<[1], [0], [0], [1], [0, 0, 1, 1], [], []>} : vector<16x128xbf16>, vector<128x128xbf16>, vector<16x128xf32> -> vector<16x128xf32>
    %c0_3 = arith.constant 0 : index
    %c0_4 = arith.constant 0 : index
    %3 = vector.load %arg3[%c0_3, %c0_4] : memref<1x128xf32, #tpu.memory_space<vmem>>, vector<1x128xf32>
    %4 = vector.broadcast %3 : vector<1x128xf32> to vector<16x128xf32>
    %5 = arith.addf %2, %4 : vector<16x128xf32>
    %6 = arith.negf %5 : vector<16x128xf32>
    %7 = math.exp %6 : vector<16x128xf32>
    %cst_5 = arith.constant 1.000000e+00 : f32
    %8 = vector.broadcast %cst_5 : f32 to vector<16x128xf32>
    %9 = arith.addf %8, %7 : vector<16x128xf32>
    %10 = arith.divf %8, %9 : vector<16x128xf32>
    %11 = arith.mulf %5, %10 : vector<16x128xf32>
    %12 = arith.truncf %11 : vector<16x128xf32> to vector<16x128xbf16>
    %c0_6 = arith.constant 0 : index
    %c0_7 = arith.constant 0 : index
    %13 = vector.load %arg4[%c0_6, %c0_7] : memref<128x128xbf16, #tpu.memory_space<vmem>>, vector<128x128xbf16>
    %cst_8 = arith.constant dense<0.000000e+00> : vector<16x128xf32>
    %14 = tpu.matmul %12, %13, %cst_8 {dimension_numbers = #tpu.dot_dimension_numbers<[1], [0], [0], [1], [0, 0, 1, 1], [], []>} : vector<16x128xbf16>, vector<128x128xbf16>, vector<16x128xf32> -> vector<16x128xf32>
    %c0_9 = arith.constant 0 : index
    %c0_10 = arith.constant 0 : index
    %15 = vector.load %arg5[%c0_9, %c0_10] : memref<1x128xf32, #tpu.memory_space<vmem>>, vector<1x128xf32>
    %16 = vector.broadcast %15 : vector<1x128xf32> to vector<16x128xf32>
    %17 = arith.addf %14, %16 : vector<16x128xf32>
    %18 = arith.negf %17 : vector<16x128xf32>
    %19 = math.exp %18 : vector<16x128xf32>
    %cst_11 = arith.constant 1.000000e+00 : f32
    %20 = vector.broadcast %cst_11 : f32 to vector<16x128xf32>
    %21 = arith.addf %20, %19 : vector<16x128xf32>
    %22 = arith.divf %20, %21 : vector<16x128xf32>
    %23 = arith.mulf %17, %22 : vector<16x128xf32>
    %24 = arith.truncf %23 : vector<16x128xf32> to vector<16x128xbf16>
    %c0_12 = arith.constant 0 : index
    %c0_13 = arith.constant 0 : index
    %25 = vector.load %arg6[%c0_12, %c0_13] : memref<128x128xbf16, #tpu.memory_space<vmem>>, vector<128x128xbf16>
    %cst_14 = arith.constant dense<0.000000e+00> : vector<16x128xf32>
    %26 = tpu.matmul %24, %25, %cst_14 {dimension_numbers = #tpu.dot_dimension_numbers<[1], [0], [0], [1], [0, 0, 1, 1], [], []>} : vector<16x128xbf16>, vector<128x128xbf16>, vector<16x128xf32> -> vector<16x128xf32>
    %c0_15 = arith.constant 0 : index
    %c0_16 = arith.constant 0 : index
    %27 = vector.load %arg7[%c0_15, %c0_16] : memref<1x128xf32, #tpu.memory_space<vmem>>, vector<1x128xf32>
    %28 = vector.broadcast %27 : vector<1x128xf32> to vector<16x128xf32>
    %29 = arith.addf %26, %28 : vector<16x128xf32>
    %c0_17 = arith.constant 0 : index
    %c0_18 = arith.constant 0 : index
    %30 = vector.load %arg8[%c0_17, %c0_18] : memref<16x128xf32, #tpu.memory_space<vmem>>, vector<16x128xf32>
    tpu.vector_store %arg8[%c0_17, %c0_18], %29 {strides = array<i32>} : memref<16x128xf32, #tpu.memory_space<vmem>>, vector<16x128xf32>,
    return
  }
  func.func @transform_0(%arg0: i32) -> (i32, i32) {
    %c0_i32 = arith.constant 0 : i32
    %c0_i32_0 = arith.constant 0 : i32
    return %arg0, %c0_i32 : i32, i32
  }
  func.func @transform_1(%arg0: i32) -> (i32, i32) {
    %c0_i32 = arith.constant 0 : i32
    %c0_i32_0 = arith.constant 0 : i32
    %c0_i32_1 = arith.constant 0 : i32
    return %c0_i32, %c0_i32_0 : i32, i32
  }
  func.func @transform_2(%arg0: i32) -> (i32, i32) {
    %c0_i32 = arith.constant 0 : i32
    %c0_i32_0 = arith.constant 0 : i32
    %c0_i32_1 = arith.constant 0 : i32
    return %c0_i32, %c0_i32_0 : i32, i32
  }
  func.func @transform_3(%arg0: i32) -> (i32, i32) {
    %c0_i32 = arith.constant 0 : i32
    %c0_i32_0 = arith.constant 0 : i32
    %c0_i32_1 = arith.constant 0 : i32
    return %c0_i32, %c0_i32_0 : i32, i32
  }
  func.func @transform_4(%arg0: i32) -> (i32, i32) {
    %c0_i32 = arith.constant 0 : i32
    %c0_i32_0 = arith.constant 0 : i32
    %c0_i32_1 = arith.constant 0 : i32
    return %c0_i32, %c0_i32_0 : i32, i32
  }
  func.func @transform_5(%arg0: i32) -> (i32, i32) {
    %c0_i32 = arith.constant 0 : i32
    %c0_i32_0 = arith.constant 0 : i32
    %c0_i32_1 = arith.constant 0 : i32
    return %c0_i32, %c0_i32_0 : i32, i32
  }
  func.func @transform_6(%arg0: i32) -> (i32, i32) {
    %c0_i32 = arith.constant 0 : i32
    %c0_i32_0 = arith.constant 0 : i32
    %c0_i32_1 = arith.constant 0 : i32
    return %c0_i32, %c0_i32_0 : i32, i32
  }
  func.func @transform_7(%arg0: i32) -> (i32, i32) {
    %c0_i32 = arith.constant 0 : i32
    %c0_i32_0 = arith.constant 0 : i32
    return %arg0, %c0_i32 : i32, i32
  }
}

</mosaic_0001>

<bundles_post_ra>
// kernel: mlp_forward.1
= control target key start
LH: loop header
LB: loop body
LE: loop exit
PB: predicated region body
PF: predicated region fallthrough
CT: control target
= control target key end

     0   :  { %v569_v0 = vmov 0.0   ;;  %vm570_vm0 = vmmov 0   ;;  %s731_s1 = inlined_call_operand.vmem [shape: bf16[128,128], index: 1, kind: input, shape index: {}]   ;;  %s732_s0 = inlined_call_operand.vmem [shape: bf16[16,128], index: 0, kind: input, shape index: {}]   ;;  %s733_s3 = inlined_call_operand.vmem [shape: bf16[128,128], index: 3, kind: input, shape index: {}]   ;;  %s734_s2 = inlined_call_operand.vmem [shape: f32[1,128], index: 2, kind: input, shape index: {}]   ;;  %s735_s5 = inlined_call_operand.vmem [shape: bf16[128,128], index: 5, kind: input, shape index: {}]   ;;  %s736_s4 = inlined_call_operand.vmem [shape: f32[1,128], index: 4, kind: input, shape index: {}]   ;;  %s737_s6 = inlined_call_operand.vmem [shape: f32[1,128], index: 6, kind: input, shape index: {}]   ;;  %s738_s7 = inlined_call_operand.vmem [shape: f32[16,128], index: 7, kind: output, shape index: {}]  }
   0x1   :  { %466 = vmatprep.subr.bf16.mxu0 %v569_v0  ;;  %v528_v1 = vld [vmem:[%s731_s1 + $0x38] sm:$0xff]   ;;  %482 = vmatprep.mubr.msk.bf16.mxu0 %vm570_vm0, %v569_v0  ;;  %v529_v2 = vld [vmem:[%s731_s1 + $0x30] sm:$0xff]   ;;  %v530_v3 = vld [vmem:[%s731_s1 + $0x28] sm:$0xff]  }
   0x2   :  { %486 = vmatprep.subr.bf16.mxu1 %v569_v0  ;;  %502 = vmatprep.mubr.msk.bf16.mxu1 %vm570_vm0, %v569_v0  ;;  %v531_v4 = vld [vmem:[%s731_s1 + $0x20] sm:$0xff]   ;;  %v532_v5 = vld [vmem:[%s731_s1 + $0x18] sm:$0xff]   ;;  %v533_v6 = vld [vmem:[%s731_s1 + $0x10] sm:$0xff]  }
   0x3   :  { %467 = vmatpush3.bf16.msra.mxu0 %v528_v1  ;;  %v534_v7 = vld [vmem:[%s731_s1 + $0x8] sm:$0xff]   ;;  %v535_v8 = vld [vmem:[%s731_s1] sm:$0xff]   ;;  %v537_v10 = vld [vmem:[%s733_s3 + $0x38] sm:$0xff]  }
   0x4   :  { %468 = vmatprep.subr.bf16.mxu0 %v569_v0  ;;  %v536_v9 = vld [vmem:[%s732_s0] sm:$0xff]   ;;  %487 = vmatpush3.bf16.msra.mxu1 %v537_v10  ;;  %v538_v11 = vld [vmem:[%s733_s3 + $0x30] sm:$0xff]   ;;  %v539_v12 = vld [vmem:[%s733_s3 + $0x28] sm:$0xff]  }
   0x5   :  { %488 = vmatprep.subr.bf16.mxu1 %v569_v0  ;;  %v540_v13 = vld [vmem:[%s733_s3 + $0x20] sm:$0xff]   ;;  %v541_v14 = vld [vmem:[%s733_s3 + $0x18] sm:$0xff]   ;;  %v542_v15 = vld [vmem:[%s733_s3 + $0x10] sm:$0xff]  }
   0x6   :  { %v543_v16 = vld [vmem:[%s733_s3 + $0x8] sm:$0xff]   ;;  %v544_v17 = vld [vmem:[%s733_s3] sm:$0xff]   ;;  %v545_v36 = vld [vmem:[%s735_s5 + $0x38] sm:$0xff]  }
   0x7   :  { %469 = vmatpush3.bf16.msra.mxu0 %v529_v2  ;;  %v407_v18 = vld [vmem:[%s734_s2] ss:$0 sm:$0xff]  ;;  %v546_v37 = vld [vmem:[%s735_s5 + $0x30] sm:$0xff]   ;;  %v547_v38 = vld [vmem:[%s735_s5 + $0x28] sm:$0xff]  }
   0x8   :  { %470 = vmatprep.subr.bf16.mxu0 %v569_v0  ;;  %489 = vmatpush3.bf16.msra.mxu1 %v538_v11  ;;  %v548_v39 = vld [vmem:[%s735_s5 + $0x20] sm:$0xff]   ;;  %v549_v40 = vld [vmem:[%s735_s5 + $0x18] sm:$0xff]   ;;  %v550_v41 = vld [vmem:[%s735_s5 + $0x10] sm:$0xff]  }
   0x9   :  { %490 = vmatprep.subr.bf16.mxu1 %v569_v0  ;;  %v551_v42 = vld [vmem:[%s735_s5 + $0x8] sm:$0xff]   ;;  %v552_v43 = vld [vmem:[%s735_s5] sm:$0xff]  }
   0xa   :  { %v419_v44 = vld [vmem:[%s736_s4] ss:$0 sm:$0xff] }
   0xb   :  { %471 = vmatpush3.bf16.msra.mxu0 %v530_v3  ;;  %v430_v62 = vld [vmem:[%s737_s6] ss:$0 sm:$0xff] }
   0xc   :  { %472 = vmatprep.subr.bf16.mxu0 %v569_v0  ;;  %491 = vmatpush3.bf16.msra.mxu1 %v539_v12 }
   0xd   :  { %492 = vmatprep.subr.bf16.mxu1 %v569_v0 }
   0xf   :  { %473 = vmatpush3.bf16.msra.mxu0 %v531_v4 }
  0x10   :  { %474 = vmatprep.subr.bf16.mxu0 %v569_v0  ;;  %493 = vmatpush3.bf16.msra.mxu1 %v540_v13 }
  0x11   :  { %494 = vmatprep.subr.bf16.mxu1 %v569_v0 }
  0x13   :  { %475 = vmatpush3.bf16.msra.mxu0 %v532_v5 }
  0x14   :  { %476 = vmatprep.subr.bf16.mxu0 %v569_v0  ;;  %495 = vmatpush3.bf16.msra.mxu1 %v541_v14 }
  0x15   :  { %496 = vmatprep.subr.bf16.mxu1 %v569_v0 }
  0x17   :  { %477 = vmatpush3.bf16.msra.mxu0 %v533_v6 }
  0x18   :  { %478 = vmatprep.subr.bf16.mxu0 %v569_v0  ;;  %497 = vmatpush3.bf16.msra.mxu1 %v542_v15 }
  0x19   :  { %498 = vmatprep.subr.bf16.mxu1 %v569_v0 }
  0x1b   :  { %479 = vmatpush3.bf16.msra.mxu0 %v534_v7 }
  0x1c   :  { %480 = vmatprep.subr.bf16.mxu0 %v569_v0  ;;  %499 = vmatpush3.bf16.msra.mxu1 %v543_v16 }
  0x1d   :  { %500 = vmatprep.subr.bf16.mxu1 %v569_v0 }
  0x1f   :  { %481 = vmatpush3.bf16.msra.mxu0 %v535_v8 }
  0x20   :  { %506 = vmatprep.subr.bf16.mxu0 %v569_v0  ;;  %501 = vmatpush3.bf16.msra.mxu1 %v544_v17 }
  0x22   :  { %483 = vmatmul.mubr.bf16.vlgmr.msra.gmra.mxu0 %v536_v9 }
  0x23   :  { %522 = vmatprep.mubr.msk.bf16.mxu0 %vm570_vm0, %v569_v0  ;;  %507 = vmatpush3.bf16.msra.mxu0 %v545_v36 }
  0x24   :  { %508 = vmatprep.subr.bf16.mxu0 %v569_v0 }
  0x27   :  { %509 = vmatpush3.bf16.msra.mxu0 %v546_v37 }
  0x28   :  { %510 = vmatprep.subr.bf16.mxu0 %v569_v0 }
  0x2b   :  { %511 = vmatpush3.bf16.msra.mxu0 %v547_v38 }
  0x2c   :  { %512 = vmatprep.subr.bf16.mxu0 %v569_v0 }
  0x2f   :  { %513 = vmatpush3.bf16.msra.mxu0 %v548_v39 }
  0x30   :  { %514 = vmatprep.subr.bf16.mxu0 %v569_v0 }
  0x33   :  { %515 = vmatpush3.bf16.msra.mxu0 %v549_v40 }
  0x34   :  { %516 = vmatprep.subr.bf16.mxu0 %v569_v0 }
  0x37   :  { %517 = vmatpush3.bf16.msra.mxu0 %v550_v41 }
  0x38   :  { %518 = vmatprep.subr.bf16.mxu0 %v569_v0 }
  0x3b   :  { %519 = vmatpush3.bf16.msra.mxu0 %v551_v42 }
  0x3c   :  { %520 = vmatprep.subr.bf16.mxu0 %v569_v0 }
  0x3f   :  { %521 = vmatpush3.bf16.msra.mxu0 %v552_v43 }
  0xe2   :  { %v140_v19 = vpop.f32.mrf.mxu0 }
  0xe3   :  { %v141_v20 = vadd.f32 %v407_v18, %v140_v19 }
  0xe4   :  { %v484_v21 = vpop.f32.mrf.mxu0 }
  0xe5   :  { %v417_v22 = vmul.f32 -1.442695, %v141_v20 }
  0xe6   :  { %v143_v23 = vpop.f32.mrf.mxu0 }
  0xe7   :  { %553 = vpow2.f32 %v417_v22  ;;  %v144_v24 = vadd.f32 %v407_v18, %v143_v23 }
  0xe8   :  { %v485_v25 = vpop.f32.mrf.mxu0 }
  0xe9   :  { %v418_v26 = vmul.f32 -1.442695, %v144_v24 }
  0xeb   :  { %555 = vpow2.f32 %v418_v26 }
  0xf4   :  { %v554_v27 = vpop.eup %553 }
  0xf5   :  { %v153_v28 = vadd.f32 1.0, %v554_v27 }
  0xf7   :  { %557 = vrcp.f32 %v153_v28 }
  0xf8   :  { %v556_v29 = vpop.eup %555 }
  0xf9   :  { %v154_v30 = vadd.f32 1.0, %v556_v29 }
  0xfb   :  { %559 = vrcp.f32 %v154_v30 }
 0x104   :  { %v558_v31 = vpop.eup %557 }
 0x105   :  { %v159_v33 = vmul.f32 %v558_v31, %v141_v20 }
 0x108   :  { %v560_v32 = vpop.eup %559 }
 0x109   :  { %v160_v34 = vmul.f32 %v560_v32, %v144_v24 }
 0x10b   :  { %v161_v35 = vpack.c.bf16 %v160_v34, %v159_v33 }
 0x10d   :  { %503 = vmatmul.mubr.bf16.vlgmr.msra.gmra.mxu1 %v161_v35 }
 0x1cd   :  { %v267_v45 = vpop.f32.mrf.mxu1 }
 0x1ce   :  { %v268_v46 = vadd.f32 %v419_v44, %v267_v45 }
 0x1cf   :  { %v504_v47 = vpop.f32.mrf.mxu1 }
 0x1d0   :  { %v428_v48 = vmul.f32 -1.442695, %v268_v46 }
 0x1d1   :  { %v270_v49 = vpop.f32.mrf.mxu1 }
 0x1d2   :  { %561 = vpow2.f32 %v428_v48  ;;  %v271_v50 = vadd.f32 %v419_v44, %v270_v49 }
 0x1d3   :  { %v505_v51 = vpop.f32.mrf.mxu1 }
 0x1d4   :  { %v429_v52 = vmul.f32 -1.442695, %v271_v50 }
 0x1d6   :  { %563 = vpow2.f32 %v429_v52 }
 0x1df   :  { %v562_v53 = vpop.eup %561 }
 0x1e0   :  { %v280_v54 = vadd.f32 1.0, %v562_v53 }
 0x1e2   :  { %565 = vrcp.f32 %v280_v54 }
 0x1e3   :  { %v564_v55 = vpop.eup %563 }
 0x1e4   :  { %v281_v56 = vadd.f32 1.0, %v564_v55 }
 0x1e6   :  { %567 = vrcp.f32 %v281_v56 }
 0x1ef   :  { %v566_v57 = vpop.eup %565 }
 0x1f0   :  { %v286_v59 = vmul.f32 %v566_v57, %v268_v46 }
 0x1f3   :  { %v568_v58 = vpop.eup %567 }
 0x1f4   :  { %v287_v60 = vmul.f32 %v568_v58, %v271_v50 }
 0x1f6   :  { %v288_v61 = vpack.c.bf16 %v287_v60, %v286_v59 }
 0x1f8   :  { %523 = vmatmul.mubr.bf16.vlgmr.msra.gmra.mxu0 %v288_v61 }
 0x2b8   :  { %v394_v63 = vpop.f32.mrf.mxu0 }
 0x2b9   :  { %v395_v0 = vadd.f32 %v430_v62, %v394_v63 }
 0x2ba   :  { %v524_v1 = vpop.f32.mrf.mxu0 }
 0x2bb   :  { %401 = vst [vmem:[%s738_s7] sm:$0xff] %v395_v0 }
 0x2bc   :  { %v397_v2 = vpop.f32.mrf.mxu0 }
 0x2bd   :  { %v398_v3 = vadd.f32 %v430_v62, %v397_v2 }
 0x2be   :  { %v525_v4 = vpop.f32.mrf.mxu0 }
 0x2bf   :  { %402 = vst [vmem:[%s738_s7 + $0x8] sm:$0xff] %v398_v3 }

</bundles_post_ra>
